<compile_context>
chip_gen: v6e
topology: v6e:2x2x1
jax: 0.10.0
libtpu: 0.0.40
codegen_flags: <defaults>
</compile_context>

<pallas_src>
import jax
import jax.numpy as jnp
from jax.experimental import pallas as pl
from jax.experimental.pallas import tpu as pltpu


def _qvalue_kernel(xT_ref, aT_ref, w1xT_ref, w1aT_ref, b1_ref, w2_ref, b2_ref,
                   out_ref):
    # xT_ref  : (S, TB) bf16      aT_ref  : (A, TB) bf16
    # w1xT_ref: (H, S)  bf16      w1aT_ref: (H, A)  bf16
    # b1_ref  : (H, 1)  f32       w2_ref  : (H, 1)  f32  (fc2 weight, column)
    # b2_ref  : (1,)    f32 scalar in SMEM
    # out_ref : (1, TB) f32       lane-dense q row
    #
    # fc1 state part on the MXU: (H, S) @ (S, TB) -> (H, TB), f32 accumulate.
    hT = jnp.dot(w1xT_ref[...], xT_ref[...], preferred_element_type=jnp.float32)

    if aT_ref.shape[0] == 1:
        # action_dim == 1 (Pendulum): the a-contribution is an outer product;
        # do it as a VPU broadcast-multiply instead of a degenerate K=1 matmul.
        hT = hT + w1aT_ref[...].astype(jnp.float32) * aT_ref[...].astype(jnp.float32)
    else:
        hT = hT + jnp.dot(w1aT_ref[...], aT_ref[...],
                          preferred_element_type=jnp.float32)

    # Bias + ReLU on the VPU, f32 (v5e-safe).
    hT = jnp.maximum(hT + b1_ref[...], 0.0)                     # (H, TB)

    # fc2: (H -> 1) as VPU multiply + sublane reduce (XLU slot, free filler),
    # plus the SMEM scalar bias.  Result is already a lane-dense (1, TB) row.
    q = jnp.sum(hT * w2_ref[...], axis=0, keepdims=True) + b2_ref[0]
    out_ref[...] = q.astype(out_ref.dtype)


def qvalue_forward(x, a, w1, b1, w2, b2, *, block_b=4096):
    """QValueNet forward: relu(concat(x, a) @ w1 + b1) @ w2 + b2 -> (B, 1).

    Weights are stored transposed relative to PyTorch: w1 is (state+action, H),
    w2 is (H, 1).  The concat is fused into the kernel by splitting w1.
    """
    B, state_dim = x.shape
    action_dim = a.shape[1]
    hidden = w1.shape[1]

    # Split fc1's weight so torch.cat([x, a], 1) never hits HBM; feature-major.
    w1xT = jnp.transpose(w1[:state_dim]).astype(jnp.bfloat16)     # (H, S)
    w1aT = jnp.transpose(w1[state_dim:]).astype(jnp.bfloat16)     # (H, A)
    b1_col = b1.reshape(hidden, 1).astype(jnp.float32)
    w2_col = w2.reshape(hidden, 1).astype(jnp.float32)
    b2_s = b2.reshape(1).astype(jnp.float32)

    # bf16, feature-major activation streams (batch along the lane axis).
    xT = jnp.transpose(x).astype(jnp.bfloat16)                    # (S, B)
    aT = jnp.transpose(a).astype(jnp.bfloat16)                    # (A, B)

    # Batch tile: lane-aligned multiple of 128, capped so nb >= 2 on large
    # batches (lets the two v7x TensorCores split the parallel grid axis;
    # harmless on single-TC v5e/v6e).  Pad ragged batches, slice back after.
    blk = max(128, (block_b // 128) * 128)
    half = ((pl.cdiv(B, 2) + 127) // 128) * 128
    TB = min(blk, half)
    nb = pl.cdiv(B, TB)
    Bp = nb * TB
    if Bp != B:
        pad = Bp - B
        xT = jnp.pad(xT, ((0, 0), (0, pad)))
        aT = jnp.pad(aT, ((0, 0), (0, pad)))

    def const(shp):
        # Weight/bias block == full array, same block index every grid step
        # (stays resident in VMEM across batch tiles).
        return pl.BlockSpec(shp, lambda i: tuple(0 for _ in shp))

    q_row = pl.pallas_call(
        _qvalue_kernel,
        out_shape=jax.ShapeDtypeStruct((1, Bp), jnp.float32),
        grid=(nb,),
        in_specs=[
            pl.BlockSpec((state_dim, TB), lambda i: (0, i)),
            pl.BlockSpec((action_dim, TB), lambda i: (0, i)),
            const((hidden, state_dim)),
            const((hidden, action_dim)),
            const((hidden, 1)),
            const((hidden, 1)),
            pl.BlockSpec(memory_space=pltpu.MemorySpace.SMEM),   # b2 scalar
        ],
        out_specs=pl.BlockSpec((1, TB), lambda i: (0, i)),
        compiler_params=pltpu.CompilerParams(
            dimension_semantics=("parallel",),      # batch tiles are independent
            vmem_limit_bytes=32 * 1024 * 1024,      # v7x-safe (64 MiB physical)
        ),
    )(xT, aT, w1xT, w1aT, b1_col, w2_col, b2_s)

    # Lane-dense (1, Bp) row back to (B, 1); drops exactly the padded columns.
    return q_row[0, :B].reshape(B, 1)


def init_params(key, state_dim, hidden_dim, action_dim):
    """Deterministic init matching PyTorch Linear default (uniform +-1/sqrt(fan_in))."""
    k1, k2, k3, k4 = jax.random.split(key, 4)
    in1 = state_dim + action_dim
    bound1 = 1.0 / jnp.sqrt(in1)
    bound2 = 1.0 / jnp.sqrt(hidden_dim)
    # Stored as (in_features, out_features) — i.e. transposed PyTorch layout.
    w1 = jax.random.uniform(k1, (in1, hidden_dim), jnp.float32, -bound1, bound1)
    b1 = jax.random.uniform(k2, (hidden_dim,), jnp.float32, -bound1, bound1)
    w2 = jax.random.uniform(k3, (hidden_dim, 1), jnp.float32, -bound2, bound2)
    b2 = jax.random.uniform(k4, (1,), jnp.float32, -bound2, bound2)
    return w1, b1, w2, b2


if __name__ == "__main__":
    # Pendulum-v1: state_dim=3, action_dim=1, hidden_dim=128 (small shapes).
    state_dim, action_dim, hidden_dim = 3, 1, 128
    batch = 300   # > 128 so the tiled multi-step grid + pad/slice-back is exercised

    key = jax.random.PRNGKey(0)
    kx, ka, kp = jax.random.split(key, 3)
    x = jax.random.normal(kx, (batch, state_dim), jnp.float32)
    a = jax.random.normal(ka, (batch, action_dim), jnp.float32)
    w1, b1, w2, b2 = init_params(kp, state_dim, hidden_dim, action_dim)

    # block_b=128 forces a 3-step batch grid at this small size so the tiled,
    # weight-resident path is actually exercised (default is 4096).
    q = qvalue_forward(x, a, w1, b1, w2, b2, block_b=128)
    jax.block_until_ready(q)

    # Pure-JAX reference using the same bf16 fc1 operands / f32 accumulation.
    xa = jnp.concatenate([x, a], axis=1).astype(jnp.bfloat16)
    h_ref = jnp.maximum(
        jnp.dot(xa, w1.astype(jnp.bfloat16), preferred_element_type=jnp.float32) + b1,
        0.0)
    ref = jnp.dot(h_ref, w2, precision=jax.lax.Precision.HIGHEST) + b2
    assert q.shape == (batch, 1)
    assert jnp.allclose(q, ref, atol=1e-3, rtol=1e-3)

    print("KERNEL_OK")
</pallas_src>

<mosaic_0001>
module attributes {stable_mosaic.version = 11 : i64} {
  func.func @_qvalue_kernel(%arg0: i32, %arg1: memref<3x128xbf16, #tpu.memory_space<vmem>>, %arg2: memref<1x128xbf16, #tpu.memory_space<vmem>>, %arg3: memref<128x3xbf16, #tpu.memory_space<vmem>>, %arg4: memref<128x1xbf16, #tpu.memory_space<vmem>>, %arg5: memref<128x1xf32, #tpu.memory_space<vmem>>, %arg6: memref<128x1xf32, #tpu.memory_space<vmem>>, %arg7: memref<1xf32, #tpu.memory_space<smem>>, %arg8: memref<1x128xf32, #tpu.memory_space<vmem>>) attributes {dimension_semantics = [#tpu.dimension_semantics<parallel>], iteration_bounds = array<i64: 3>, scalar_prefetch = 0 : i64, scratch_operands = 0 : i64, tpu.core_type = #tpu.core_type<tc>, window_params = [{transform_indices = @transform_0, window_bounds = array<i64: 3, 128>}, {transform_indices = @transform_1, window_bounds = array<i64: 1, 128>}, {pipeline_mode = #tpu.pipeline_mode<synchronous>, transform_indices = @transform_2, window_bounds = array<i64: 128, 3>}, {pipeline_mode = #tpu.pipeline_mode<synchronous>, transform_indices = @transform_3, window_bounds = array<i64: 128, 1>}, {pipeline_mode = #tpu.pipeline_mode<synchronous>, transform_indices = @transform_4, window_bounds = array<i64: 128, 1>}, {pipeline_mode = #tpu.pipeline_mode<synchronous>, transform_indices = @transform_5, window_bounds = array<i64: 128, 1>}, {transform_indices = @transform_6, window_bounds = array<i64: 1>}, {transform_indices = @transform_7, window_bounds = array<i64: 1, 128>}]} {
    %c0 = arith.constant 0 : index
    %c0_0 = arith.constant 0 : index
    %0 = vector.load %arg3[%c0, %c0_0] : memref<128x3xbf16, #tpu.memory_space<vmem>>, vector<128x3xbf16>
    %c0_1 = arith.constant 0 : index
    %c0_2 = arith.constant 0 : index
    %1 = vector.load %arg1[%c0_1, %c0_2] : memref<3x128xbf16, #tpu.memory_space<vmem>>, vector<3x128xbf16>
    %cst = arith.constant dense<0.000000e+00> : vector<128x128xf32>
    %2 = tpu.matmul %0, %1, %cst {dimension_numbers = #tpu.dot_dimension_numbers<[1], [0], [0], [1], [0, 0, 1, 1], [], []>} : vector<128x3xbf16>, vector<3x128xbf16>, vector<128x128xf32> -> vector<128x128xf32>
    %c0_3 = arith.constant 0 : index
    %c0_4 = arith.constant 0 : index
    %3 = vector.load %arg4[%c0_3, %c0_4] : memref<128x1xbf16, #tpu.memory_space<vmem>>, vector<128x1xbf16>
    %4 = arith.extf %3 : vector<128x1xbf16> to vector<128x1xf32>
    %c0_5 = arith.constant 0 : index
    %c0_6 = arith.constant 0 : index
    %5 = vector.load %arg2[%c0_5, %c0_6] : memref<1x128xbf16, #tpu.memory_space<vmem>>, vector<1x128xbf16>
    %6 = arith.extf %5 : vector<1x128xbf16> to vector<1x128xf32>
    %7 = vector.broadcast %4 : vector<128x1xf32> to vector<128x128xf32>
    %8 = vector.broadcast %6 : vector<1x128xf32> to vector<128x128xf32>
    %9 = arith.mulf %7, %8 : vector<128x128xf32>
    %10 = arith.addf %2, %9 : vector<128x128xf32>
    %c0_7 = arith.constant 0 : index
    %c0_8 = arith.constant 0 : index
    %11 = vector.load %arg5[%c0_7, %c0_8] : memref<128x1xf32, #tpu.memory_space<vmem>>, vector<128x1xf32>
    %12 = vector.broadcast %11 : vector<128x1xf32> to vector<128x128xf32>
    %13 = arith.addf %10, %12 : vector<128x128xf32>
    %cst_9 = arith.constant 0.000000e+00 : f32
    %14 = vector.broadcast %cst_9 : f32 to vector<128x128xf32>
    %15 = arith.maximumf %13, %14 : vector<128x128xf32>
    %c0_10 = arith.constant 0 : index
    %c0_11 = arith.constant 0 : index
    %16 = vector.load %arg6[%c0_10, %c0_11] : memref<128x1xf32, #tpu.memory_space<vmem>>, vector<128x1xf32>
    %17 = vector.broadcast %16 : vector<128x1xf32> to vector<128x128xf32>
    %18 = arith.mulf %15, %17 : vector<128x128xf32>
    %cst_12 = arith.constant dense<0.000000e+00> : vector<128xf32>
    %19 = vector.multi_reduction <add>, %18, %cst_12 [0] : vector<128x128xf32> to vector<128xf32>
    %20 = vector.shape_cast %19 : vector<128xf32> to vector<1x128xf32>
    %c0_13 = arith.constant 0 : index
    %21 = memref.load %arg7[%c0_13] : memref<1xf32, #tpu.memory_space<smem>>
    %22 = vector.broadcast %21 : f32 to vector<1x128xf32>
    %23 = arith.addf %20, %22 : vector<1x128xf32>
    %c0_14 = arith.constant 0 : index
    %c0_15 = arith.constant 0 : index
    %24 = vector.load %arg8[%c0_14, %c0_15] : memref<1x128xf32, #tpu.memory_space<vmem>>, vector<1x128xf32>
    tpu.vector_store %arg8[%c0_14, %c0_15], %23 {strides = array<i32>} : memref<1x128xf32, #tpu.memory_space<vmem>>, vector<1x128xf32>,
    return
  }
  func.func @transform_0(%arg0: i32) -> (i32, i32) {
    %c0_i32 = arith.constant 0 : i32
    %c0_i32_0 = arith.constant 0 : i32
    return %c0_i32, %arg0 : i32, i32
  }
  func.func @transform_1(%arg0: i32) -> (i32, i32) {
    %c0_i32 = arith.constant 0 : i32
    %c0_i32_0 = arith.constant 0 : i32
    return %c0_i32, %arg0 : i32, i32
  }
  func.func @transform_2(%arg0: i32) -> (i32, i32) {
    %c0_i32 = arith.constant 0 : i32
    %c0_i32_0 = arith.constant 0 : i32
    %c0_i32_1 = arith.constant 0 : i32
    return %c0_i32, %c0_i32_0 : i32, i32
  }
  func.func @transform_3(%arg0: i32) -> (i32, i32) {
    %c0_i32 = arith.constant 0 : i32
    %c0_i32_0 = arith.constant 0 : i32
    %c0_i32_1 = arith.constant 0 : i32
    return %c0_i32, %c0_i32_0 : i32, i32
  }
  func.func @transform_4(%arg0: i32) -> (i32, i32) {
    %c0_i32 = arith.constant 0 : i32
    %c0_i32_0 = arith.constant 0 : i32
    %c0_i32_1 = arith.constant 0 : i32
    return %c0_i32, %c0_i32_0 : i32, i32
  }
  func.func @transform_5(%arg0: i32) -> (i32, i32) {
    %c0_i32 = arith.constant 0 : i32
    %c0_i32_0 = arith.constant 0 : i32
    %c0_i32_1 = arith.constant 0 : i32
    return %c0_i32, %c0_i32_0 : i32, i32
  }
  func.func @transform_6(%arg0: i32) -> i32 {
    %c0_i32 = arith.constant 0 : i32
    %c0_i32_0 = arith.constant 0 : i32
    return %c0_i32 : i32
  }
  func.func @transform_7(%arg0: i32) -> (i32, i32) {
    %c0_i32 = arith.constant 0 : i32
    %c0_i32_0 = arith.constant 0 : i32
    return %c0_i32, %arg0 : i32, i32
  }
}

</mosaic_0001>

<bundles_post_ra>
// kernel: tpu_custom_call.1
= control target key start
LH: loop header
LB: loop body
LE: loop exit
PB: predicated region body
PF: predicated region fallthrough
CT: control target
= control target key end

     0   :  { %s1597_s0 = inlined_call_operand.vmem [shape: bf16[3,384], index: 0, kind: input, shape index: {}]   ;;  %s1598_s1 = inlined_call_operand.vmem [shape: bf16[1,384], index: 1, kind: input, shape index: {}]   ;;  %s1599_s2 = inlined_call_operand.vmem [shape: bf16[128,3], index: 2, kind: input, shape index: {}]   ;;  %s1600_s3 = inlined_call_operand.vmem [shape: bf16[128,1], index: 3, kind: input, shape index: {}]   ;;  %s1601_s4 = inlined_call_operand.vmem [shape: f32[128,1], index: 4, kind: input, shape index: {}]   ;;  %s1602_s5 = inlined_call_operand.vmem [shape: f32[128,1], index: 5, kind: input, shape index: {}]   ;;  %s1603_s6 = inlined_call_operand.<no memory space> [shape: f32[1], index: 6, kind: input, shape index: {}]   ;;  %s1604_s7 = inlined_call_operand.hbm [shape: f32[1,384], index: 7, kind: output, shape index: {}]  }
   0x1   :  { %12 = sst [smem:[#allocation2]] %s1603_s6 }
   0x2   :  { %13 = vsyncpa [#allocation4], 0 }
   0x3   :  { %15 = vsyncpa [#allocation4 + $0x1], 0  ;;  %s1242_s26 = smov 0   ;;  %s1244_s27 = smov 0  }
   0x4   :  { %s1246_s28 = smov 0   ;;  %s1248_s29 = smov 0  }
   0x5 LB: > { %s1263_s6 = sadd.s32 4294967295, %s1194_s29   ;;  %s951_s30 = sadd.s32 4294967294, %s1194_s29   ;;  %s1194_s29 = sphi %s1248_s29, %s1610_s29   ;;  %s1190_s28 = sphi %s1246_s28, %s1609_s28   ;;  %s1186_s27 = sphi %s1244_s27, %s1608_s27   ;;  %s1182_s26 = sphi %s1242_s26, %s1607_s26  }
   0x6   : > { %s1267_s8 = sadd.s32 1, %s1194_s29   ;;  %s185_s9 = sadd.s32 1, %s1190_s28 }
   0x7   : > { %s182_s10 = ssub.s32 %s1194_s29, %s1267_s8  ;;  %p195_p0 = scmp.ne.s32.totalorder %s1190_s28, %s1186_s27 }
   0x8   : > { %p183_p1 = scmp.eq.s32.totalorder %s182_s10, 0  ;;  %p196_p2 = scmp.eq.s32.totalorder %s1263_s6, 2 }
   0x9   : > { %p201_p3 = scmp.ne.s32.totalorder %s1186_s27, %s1182_s26  ;;  %p202_p4 = scmp.eq.s32.totalorder %s951_s30, 2 }
   0xa   : > { %s1278_s11 = scalar_select %p183_p1, %s1190_s28, %s185_s9  }
   0xb   : > { %p1280_p5 = por %p196_p2, %p195_p0  ;;  %p1284_p6 = por %p202_p4, %p201_p3 }
   0xc   : > { %p954_p7 = scmp.ge.s32.totalorder %s1194_s29, 1  ;;  %p248_p8 = scmp.lt.s32.totalorder %s1194_s29, 4 }
   0xe   : > { %p249_p9 = pnand %p954_p7, %p248_p8 }
   0xf   : > { %p281_p10 = scmp.lt.s32.totalorder (!%p249_p9), %s1263_s6, 2  ;;  %s972_s20 = sshll.u32 (!%p249_p9), %s1263_s6, 4 }
  0x10   : > { %252 = sbr.rel (%p249_p9) target bundleno = 299 (0x12b), region = 48  ;;  %s885_s30 = scalar_lea.hbm (!%p249_p9), %s1604_s7, %s972_s20 }
  0x11   : > { %s1198_s14 = smov (!%p249_p9), [#allocation3]  }
  0x12   : > { %s1138_s15 = sshll.u32 (!%p249_p9), %s1198_s14, 4  ;;  %s1139_s15 = int_to_ptr.vmem [resolvable:$false] %s1138_s15 }
  0x15   : > { %v1008_v0 = vld [vmem:[%s1600_s3 + $0x10] sm:$0xff]   ;;  %v976_v1 = vld [vmem:[%s1600_s3] sm:$0xff]   ;;  %v1009_v2 = vld [vmem:[%s1600_s3 + $0x18] sm:$0xff]   ;;  %vm505_vm0 = vcmask 1040384   ;;  %v1196_v3 = vmov 0   ;;  %s1306_s22 = scalar_select %p281_p10, %s1263_s6, 2 }
  0x16   : > { %1095 = vset.pattern.permute.xlu1 %v1196_v3  ;;  %1084 = vset.pattern.permute.xlu0 %v1196_v3  ;;  %v985_v4 = vunpack.c.l.bf16 %v1008_v0  ;;  %v986_v5 = vunpack.c.h.bf16 %v1008_v0  ;;  %v977_v6 = vunpack.c.l.bf16 %v976_v1  ;;  %v978_v7 = vunpack.c.h.bf16 %v976_v1  ;;  %v1007_v8 = vld [vmem:[%s1600_s3 + $0x8] sm:$0xff]   ;;  %v1126_v13 = vld [vmem:[%s1599_s2] sm:$0xff]   ;;  %v1013_v30 = vld [vmem:[%s1600_s3 + $0x38] sm:$0xff]   ;;  %s1140_s6 = scalar_lea.vmem %s1139_s15, 32 }
  0x17   : > { %v989_v9 = vunpack.c.l.bf16 %v1009_v2  ;;  %v990_v10 = vunpack.c.h.bf16 %v1009_v2  ;;  %v981_v11 = vunpack.c.l.bf16 %v1007_v8  ;;  %v982_v12 = vunpack.c.h.bf16 %v1007_v8  ;;  %v1127_v16 = vld [vmem:[%s1599_s2 + $0x20] sm:$0xff]   ;;  %v1011_v17 = vld [vmem:[%s1600_s3 + $0x28] sm:$0xff]   ;;  %s955_s16 = sshll.u32 %s1306_s22, 1  ;;  %v1012_v31 = vld [vmem:[%s1600_s3 + $0x30] sm:$0xff]   ;;  %s287_s18 = scalar_lea.vmem %s1598_s1, %s1306_s22 }
  0x18   : > { %v1096_v14 = vpack.i.bf16 %v986_v5, %v985_v4  ;;  %v1085_v15 = vpack.i.bf16 %v978_v7, %v977_v6  ;;  %vm506_vm1 = vcmask 1041408   ;;  %v1010_v18 = vld [vmem:[%s1600_s3 + $0x20] sm:$0xff]   ;;  %vm480_vm2 = vcmask 23552   ;;  %s284_s19 = scalar_lea.vmem %s1597_s0, %s955_s16  ;;  %v1128_v34 = vld [vmem:[%s1599_s2 + $0x8] sm:$0xff]   ;;  %v1130_v40 = vld [vmem:[%s1599_s2 + $0x10] sm:$0xff]   ;;  %s870_s22 = sld [smem:[#allocation2]] }
  0x19   : > { %v1101_v19 = vpack.i.bf16 %v990_v10, %v989_v9  ;;  %v1090_v20 = vpack.i.bf16 %v982_v12, %v981_v11  ;;  %v1197_v21 = vmov 65535   ;;  %v997_v23 = vunpack.c.l.bf16 %v1011_v17  ;;  %v305_v25 = vld [vmem:[%s284_s19] sm:$0x3]  ;;  %1025 = vmatprep.mubr.msk.bf16.mxu0 %vm480_vm2, %v1126_v13  ;;  %1033 = vmatprep.mubr.msk.bf16.mxu1 %vm480_vm2, %v1127_v16  ;;  %v1129_v39 = vld [vmem:[%s1599_s2 + $0x28] sm:$0xff]   ;;  %v1131_v41 = vld [vmem:[%s1599_s2 + $0x30] sm:$0xff]   ;;  %s279_s19 = sand.u32 1, %s1186_s27  }
  0x1a   : > { %1097 = vperm.xlu1 %1095, %v1096_v14   ;;  %1086 = vperm.xlu0 %1084, %v1085_v15   ;;  %v507_v22 = vsel %vm505_vm0, 4294967295, %v1197_v21  ;;  %v998_v24 = vunpack.c.h.bf16 %v1011_v17  ;;  %v993_v27 = vunpack.c.l.bf16 %v1010_v18  ;;  %v994_v28 = vunpack.c.h.bf16 %v1010_v18  ;;  %v610_v44 = vld [vmem:[%s1601_s4 + $0x8] sm:$0xff]  ;;  %v609_v45 = vld [vmem:[%s1601_s4] sm:$0xff]  ;;  %v1132_v46 = vld [vmem:[%s1599_s2 + $0x18] sm:$0xff]   ;;  %s280_s21 = scalar_lea.vmem [#allocation3], %s279_s19  ;;  %s875_s9 = scalar_lea.sflag [#allocation4], %s279_s19 }
  0x1b   : > { %v508_v26 = vsel %vm506_vm1, %v507_v22, 0  ;;  %v1005_v35 = vunpack.c.l.bf16 %v1013_v30  ;;  %v1006_v36 = vunpack.c.h.bf16 %v1013_v30  ;;  %v1001_v37 = vunpack.c.l.bf16 %v1012_v31  ;;  %v1133_v47 = vld [vmem:[%s1599_s2 + $0x38] sm:$0xff]   ;;  %v611_v49 = vld [vmem:[%s1601_s4 + $0x10] sm:$0xff]  ;;  %v737_v50 = vld [vmem:[%s1602_s5] sm:$0xff]  ;;  %s887_s23 = sshll.u32 %s280_s21, 4  ;;  %s888_s23 = int_to_ptr.vmem [resolvable:$true] %s887_s23 }
  0x1c   : > { %v510_v29 = vand.u32 %v508_v26, %v305_v25  ;;  %v1111_v32 = vpack.i.bf16 %v998_v24, %v997_v23  ;;  %v1106_v33 = vpack.i.bf16 %v994_v28, %v993_v27  ;;  %v1002_v38 = vunpack.c.h.bf16 %v1012_v31  ;;  %v612_v48 = vld [vmem:[%s1601_s4 + $0x18] sm:$0xff]  ;;  %v613_v51 = vld [vmem:[%s1601_s4 + $0x20] sm:$0xff]  ;;  %v739_v52 = vld [vmem:[%s1602_s5 + $0x10] sm:$0xff]  ;;  %s1134_s10 = scalar_lea.vmem %s888_s23, 16  ;;  %p1141_p0 = scmp.lt.s32.totalorder %s888_s23, %s1139_s15 }
  0x1d   : > { %v1121_v42 = vpack.i.bf16 %v1006_v36, %v1005_v35  ;;  %v738_v53 = vld [vmem:[%s1602_s5 + $0x8] sm:$0xff]  ;;  %v740_v54 = vld [vmem:[%s1602_s5 + $0x18] sm:$0xff]  ;;  %v741_v56 = vld [vmem:[%s1602_s5 + $0x20] sm:$0xff]  ;;  %p1135_p11 = scmp.ne.s32.totalorder %s888_s23, %s1134_s10  ;;  %p1142_p1 = scmp.lt.s32.totalorder %s1140_s6, %s1134_s10 }
  0x1e   : > { %1102 = vperm.xlu1 %1095, %v1101_v19   ;;  %1091 = vperm.xlu0 %1084, %v1090_v20   ;;  %v1116_v43 = vpack.i.bf16 %v1002_v38, %v1001_v37  ;;  %v614_v55 = vld [vmem:[%s1601_s4 + $0x28] sm:$0xff]  ;;  %v615_v57 = vld [vmem:[%s1601_s4 + $0x30] sm:$0xff]  ;;  %v616_v59 = vld [vmem:[%s1601_s4 + $0x38] sm:$0xff] }
  0x1f   : > { %1023 = vmatprep.subr.bf16.mxu0 %v510_v29  ;;  %1041 = vmatprep.subr.bf16.mxu1 %v510_v29  ;;  %v742_v58 = vld [vmem:[%s1602_s5 + $0x28] sm:$0xff]  ;;  %v743_v60 = vld [vmem:[%s1602_s5 + $0x30] sm:$0xff]  ;;  %v617_v61 = vld [vmem:[%s1601_s4 + $0x40] sm:$0xff]  ;;  %p1136_p12 = pnand %p1135_p11, %p1280_p5  ;;  %p1143_p2 = por %p1142_p1, %p1141_p0 }
  0x20   : > { %1024 = vmatpush3.bf16.msra.mxu0 %v510_v29  ;;  %1042 = vmatpush3.bf16.msra.mxu1 %v510_v29  ;;  %v744_v62 = vld [vmem:[%s1602_s5 + $0x38] sm:$0xff]  ;;  %v618_v63 = vld [vmem:[%s1601_s4 + $0x48] sm:$0xff]  ;;  %v745_v0 = vld [vmem:[%s1602_s5 + $0x40] sm:$0xff] }
  0x21   : > { %v619_v1 = vld [vmem:[%s1601_s4 + $0x50] sm:$0xff]  ;;  %v746_v2 = vld [vmem:[%s1602_s5 + $0x48] sm:$0xff]  ;;  %v620_v3 = vld [vmem:[%s1601_s4 + $0x58] sm:$0xff]  ;;  %p1137_p13 = pneg %p1136_p12 }
  0x22   : > { %1112 = vperm.xlu1 %1095, %v1111_v32   ;;  %1107 = vperm.xlu0 %1084, %v1106_v33   ;;  %v747_v4 = vld [vmem:[%s1602_s5 + $0x50] sm:$0xff]  ;;  %v621_v5 = vld [vmem:[%s1601_s4 + $0x60] sm:$0xff]  ;;  %v748_v6 = vld [vmem:[%s1602_s5 + $0x58] sm:$0xff] }
  0x23   : > { %1026 = vmatmul.mubr.msk.bf16.vlgmr.msra.gmra.mxu0 %vm480_vm2, %v1128_v34  ;;  %1034 = vmatmul.mubr.msk.bf16.vlgmr.msra.gmra.mxu1 %vm480_vm2, %v1129_v39  ;;  %v622_v7 = vld [vmem:[%s1601_s4 + $0x68] sm:$0xff]  ;;  %v749_v8 = vld [vmem:[%s1602_s5 + $0x60] sm:$0xff]  ;;  %v623_v9 = vld [vmem:[%s1601_s4 + $0x70] sm:$0xff]  ;;  %v420_v34 = vlaneseq  ;;  %p1144_p3 = pnand %p1143_p2, %p1137_p13 }
  0x24   : > { %1029 = vmatprep.mubr.msk.bf16.mxu0 %vm480_vm2, %v1130_v40  ;;  %1037 = vmatprep.mubr.msk.bf16.mxu1 %vm480_vm2, %v1131_v41  ;;  %v750_v10 = vld [vmem:[%s1602_s5 + $0x68] sm:$0xff]  ;;  %v624_v11 = vld [vmem:[%s1601_s4 + $0x78] sm:$0xff]  ;;  %v751_v13 = vld [vmem:[%s1602_s5 + $0x70] sm:$0xff] }
  0x25   : > { %v752_v12 = vld [vmem:[%s1602_s5 + $0x78] sm:$0xff]  ;;  %v421_v37 = vshrl.u32 %v420_v34, 7  ;;  %v338_v38 = vld [vmem:[%s287_s18] sm:$0x1] }
  0x26   : > { %1122 = vperm.xlu1 %1095, %v1121_v42   ;;  %1117 = vperm.xlu0 %1084, %v1116_v43   ;;  %v339_v40 = vunpack.c.l.bf16 %v338_v38 }
  0x27   : > { %v422_v41 = vsub.s32 0, %v421_v37 }
  0x29   : > { %v1494_v43 = vrot.slane %v339_v40, %v422_v41 }
  0x2a   : > { %632 = vperm.xlu1 %1095, %v610_v44   ;;  %627 = vperm.xlu0 %1084, %v609_v45  }
  0x2b   : > { %1030 = vmatmul.mubr.msk.bf16.gmra.mxu0 %vm480_vm2, %v1132_v46  ;;  %1038 = vmatmul.mubr.msk.bf16.gmra.mxu1 %vm480_vm2, %v1133_v47 }
  0x2e   : > { %642 = vperm.xlu1 %1095, %v612_v48   ;;  %637 = vperm.xlu0 %1084, %v611_v49  }
  0x32   : > { %755 = vperm.xlu1 %1095, %v737_v50   ;;  %647 = vperm.xlu0 %1084, %v613_v51  }
  0x36   : > { %765 = vperm.xlu1 %1095, %v739_v52   ;;  %760 = vperm.xlu0 %1084, %v738_v53  }
  0x3a   : > { %770 = vperm.xlu1 %1095, %v740_v54   ;;  %652 = vperm.xlu0 %1084, %v614_v55  }
  0x3e   : > { %775 = vperm.xlu1 %1095, %v741_v56   ;;  %657 = vperm.xlu0 %1084, %v615_v57  }
  0x42   : > { %780 = vperm.xlu1 %1095, %v742_v58   ;;  %662 = vperm.xlu0 %1084, %v616_v59  }
  0x46   : > { %785 = vperm.xlu1 %1095, %v743_v60   ;;  %667 = vperm.xlu0 %1084, %v617_v61  }
  0x4a   : > { %790 = vperm.xlu1 %1095, %v744_v62   ;;  %672 = vperm.xlu0 %1084, %v618_v63  }
  0x4e   : > { %795 = vperm.xlu1 %1095, %v745_v0   ;;  %677 = vperm.xlu0 %1084, %v619_v1  }
  0x52   : > { %800 = vperm.xlu1 %1095, %v746_v2   ;;  %682 = vperm.xlu0 %1084, %v620_v3  }
  0x56   : > { %805 = vperm.xlu1 %1095, %v747_v4   ;;  %687 = vperm.xlu0 %1084, %v621_v5  }
  0x5a   : > { %810 = vperm.xlu1 %1095, %v748_v6   ;;  %692 = vperm.xlu0 %1084, %v622_v7  }
  0x5e   : > { %815 = vperm.xlu1 %1095, %v749_v8   ;;  %697 = vperm.xlu0 %1084, %v623_v9  }
  0x62   : > { %820 = vperm.xlu1 %1095, %v750_v10   ;;  %702 = vperm.xlu0 %1084, %v624_v11  }
  0x66   : > { %830 = vperm.xlu1 %1095, %v752_v12   ;;  %825 = vperm.xlu0 %1084, %v751_v13  }
  0x95   : > { %v1087_v14 = vpop.permute.xlu0 %1086  ;;  %v1454_v15 = vpop.permute.xlu1 %1097 }
  0x96   : > { %v1088_v44 = vunpack.i.l.bf16 %v1087_v14  ;;  %v1089_v53 = vunpack.i.h.bf16 %v1087_v14  ;;  %v1099_v62 = vunpack.i.l.bf16 %v1454_v15  ;;  %v1100_v10 = vunpack.i.h.bf16 %v1454_v15 }
  0x98   : > { %v424_v52 = vmul.f32 %v1088_v44, %v1494_v43  ;;  %v425_v3 = vmul.f32 %v1089_v53, %v1494_v43  ;;  %v428_v13 = vmul.f32 %v1099_v62, %v1494_v43 }
  0x99   : > { %v1092_v16 = vpop.permute.xlu0 %1091  ;;  %v1456_v17 = vpop.permute.xlu1 %1102 }
  0x9a   : > { %v1093_v45 = vunpack.i.l.bf16 %v1092_v16  ;;  %v1094_v48 = vunpack.i.h.bf16 %v1092_v16  ;;  %v1104_v0 = vunpack.i.l.bf16 %v1456_v17  ;;  %v1105_v7 = vunpack.i.h.bf16 %v1456_v17 }
  0x9c   : > { %v426_v51 = vmul.f32 %v1093_v45, %v1494_v43  ;;  %v427_v59 = vmul.f32 %v1094_v48, %v1494_v43  ;;  %v430_v34 = vmul.f32 %v1104_v0, %v1494_v43  ;;  %v431_v45 = vmul.f32 %v1105_v7, %v1494_v43 }
  0x9d   : > { %v1458_v18 = vpop.permute.xlu0 %1107  ;;  %v1460_v19 = vpop.permute.xlu1 %1112 }
  0x9e   : > { %v1109_v11 = vunpack.i.l.bf16 %v1458_v18 }
  0xa1   : > { %v1462_v20 = vpop.permute.xlu0 %1117  ;;  %v1464_v21 = vpop.permute.xlu1 %1122 }
  0xa5   : > { %v628_v22 = vpop.permute.xlu0 %627  ;;  %v633_v23 = vpop.permute.xlu1 %632 }
  0xa9   : > { %v638_v24 = vpop.permute.xlu0 %637  ;;  %v643_v25 = vpop.permute.xlu1 %642 }
  0xad   : > { %v1466_v26 = vpop.permute.xlu0 %647  ;;  %v1468_v27 = vpop.permute.xlu1 %755 }
  0xb1   : > { %v1470_v28 = vpop.permute.xlu0 %760  ;;  %v1472_v29 = vpop.permute.xlu1 %765 }
  0xb5   : > { %v1474_v30 = vpop.permute.xlu0 %652  ;;  %v1476_v31 = vpop.permute.xlu1 %770 }
  0xb9   : > { %v1478_v32 = vpop.permute.xlu0 %657  ;;  %v1480_v33 = vpop.permute.xlu1 %775 }
  0xbd   : > { %v1482_v35 = vpop.permute.xlu0 %662  ;;  %v1488_v36 = vpop.permute.xlu1 %780 }
  0xc1   : > { %v1490_v39 = vpop.permute.xlu0 %667  ;;  %v1492_v42 = vpop.permute.xlu1 %785 }
  0xc5   : > { %v1496_v46 = vpop.permute.xlu0 %672  ;;  %v1498_v47 = vpop.permute.xlu1 %790 }
  0xc9   : > { %v1504_v56 = vpop.permute.xlu0 %677  ;;  %v1510_v63 = vpop.permute.xlu1 %795 }
  0xcd   : > { %v1517_v12 = vpop.permute.xlu0 %682  ;;  %v1522_v38 = vpop.permute.xlu1 %800 }
  0xe3   : > { %v1027_v49 = vpop.f32.mrf.mxu0  ;;  %v1500_v50 = vpop.f32.mrf.mxu1 }
  0xe4   : > { %v555_v57 = vadd.f32 %v1027_v49, %v426_v51  ;;  %v1114_v49 = vunpack.i.l.bf16 %v1460_v19  ;;  %v429_v51 = vmul.f32 %v1100_v10, %v1494_v43 }
  0xe5   : > { %v546_v54 = vpop.f32.mrf.mxu0  ;;  %v578_v55 = vpop.f32.mrf.mxu1 }
  0xe6   : > { %v547_v58 = vadd.f32 %v546_v54, %v424_v52  ;;  %v707_v5 = vadd.f32 %v638_v24, %v555_v57  ;;  %v1110_v24 = vunpack.i.h.bf16 %v1458_v18 }
  0xe7   : > { %v1028_v60 = vpop.f32.mrf.mxu0  ;;  %v1507_v61 = vpop.f32.mrf.mxu1 }
  0xe8   : > { %v705_v1 = vadd.f32 %v628_v22, %v547_v58  ;;  %v558_v2 = vadd.f32 %v1028_v60, %v427_v59  ;;  %v723_v17 = vmax.f32 %v707_v5, 0.0  ;;  %v1115_v58 = vunpack.i.h.bf16 %v1460_v19  ;;  %v688_v59 = vpop.permute.xlu0 %687  ;;  %v806_v5 = vpop.permute.xlu1 %805 }
  0xe9   : > { %v549_v4 = vpop.f32.mrf.mxu0  ;;  %v581_v6 = vpop.f32.mrf.mxu1  ;;  %v433_v0 = vmul.f32 %v1110_v24, %v1494_v43  ;;  %v1125_v24 = vunpack.i.h.bf16 %v1464_v21 }
  0xea   : > { %v550_v8 = vadd.f32 %v549_v4, %v425_v3  ;;  %v721_v14 = vmax.f32 %v705_v1, 0.0  ;;  %v708_v16 = vadd.f32 %v643_v25, %v558_v2  ;;  %v835_v60 = vmul.f32 %v1472_v29, %v723_v17 }
  0xeb   : > { %v1031_v9 = vpop.f32.mrf.mxu0  ;;  %v1524_v40 = vpop.f32.mrf.mxu1  ;;  %v582_v7 = vadd.f32 %v581_v6, %v433_v0 }
  0xec   : > { %v706_v22 = vadd.f32 %v633_v23, %v550_v8  ;;  %v571_v44 = vadd.f32 %v1031_v9, %v430_v34  ;;  %v432_v23 = vmul.f32 %v1109_v11, %v1494_v43  ;;  %v833_v18 = vmul.f32 %v1468_v27, %v721_v14  ;;  %v693_v34 = vpop.permute.xlu0 %692  ;;  %v811_v17 = vpop.permute.xlu1 %810 }
  0xed   : > { %v562_v37 = vpop.f32.mrf.mxu0  ;;  %v724_v52 = vmax.f32 %v708_v16, 0.0  ;;  %v594_v1 = vpop.f32.mrf.mxu1  ;;  %v1119_v27 = vunpack.i.l.bf16 %v1462_v20  ;;  %v1120_v9 = vunpack.i.h.bf16 %v1462_v20  ;;  %v435_v11 = vmul.f32 %v1115_v58, %v1494_v43 }
  0xee   : > { %v563_v15 = vadd.f32 %v562_v37, %v428_v13  ;;  %v722_v41 = vmax.f32 %v706_v22, 0.0  ;;  %v579_v62 = vadd.f32 %v578_v55, %v432_v23  ;;  %v714_v20 = vadd.f32 %v1496_v46, %v582_v7 }
  0xef   : > { %v1032_v48 = vpop.f32.mrf.mxu0  ;;  %v836_v19 = vmul.f32 %v1476_v31, %v724_v52  ;;  %v1040_v13 = vpop.f32.mrf.mxu1  ;;  %v1124_v31 = vunpack.i.l.bf16 %v1464_v21 }
  0xf0   : > { %v709_v25 = vadd.f32 %v1466_v26, %v563_v15  ;;  %v834_v53 = vmul.f32 %v1470_v28, %v722_v41  ;;  %v574_v54 = vadd.f32 %v1032_v48, %v431_v45  ;;  %v711_v26 = vadd.f32 %v1478_v32, %v571_v44 }
  0xf1   : > { %v565_v57 = vpop.f32.mrf.mxu0  ;;  %v434_v28 = vmul.f32 %v1114_v49, %v1494_v43  ;;  %v713_v32 = vadd.f32 %v1490_v39, %v579_v62  ;;  %v437_v15 = vmul.f32 %v1120_v9, %v1494_v43  ;;  %v597_v41 = vpop.f32.mrf.mxu1  ;;  %v438_v46 = vmul.f32 %v1124_v31, %v1494_v43 }
  0xf2   : > { %v849_v2 = vadd.f32 %v834_v53, %v833_v18  ;;  %v725_v3 = vmax.f32 %v709_v25, 0.0  ;;  %v566_v4 = vadd.f32 %v565_v57, %v429_v51  ;;  %v712_v29 = vadd.f32 %v1482_v35, %v574_v54  ;;  %v698_v51 = vpop.permute.xlu0 %697  ;;  %v816_v57 = vpop.permute.xlu1 %815 }
  0xf3   : > { %v587_v10 = vadd.f32 %v1500_v50, %v434_v28  ;;  %v727_v14 = vmax.f32 %v711_v26, 0.0  ;;  %v590_v35 = vadd.f32 %v1507_v61, %v435_v11  ;;  %v729_v44 = vmax.f32 %v713_v32, 0.0 }
  0xf4   : > { %v850_v8 = vadd.f32 %v849_v2, %v835_v60  ;;  %v710_v55 = vadd.f32 %v1474_v30, %v566_v4  ;;  %v837_v16 = vmul.f32 %v1480_v33, %v725_v3  ;;  %v436_v30 = vmul.f32 %v1119_v27, %v1494_v43 }
  0xf5   : > { %v728_v37 = vmax.f32 %v712_v29, 0.0  ;;  %v715_v33 = vadd.f32 %v1504_v56, %v587_v10  ;;  %v839_v45 = vmul.f32 %v1492_v42, %v727_v14  ;;  %v716_v49 = vadd.f32 %v1517_v12, %v590_v35 }
  0xf6   : > { %v851_v6 = vadd.f32 %v850_v8, %v836_v19  ;;  %v726_v22 = vmax.f32 %v710_v55, 0.0  ;;  %v595_v61 = vadd.f32 %v594_v1, %v436_v30  ;;  %v730_v23 = vmax.f32 %v714_v20, 0.0  ;;  %v703_v3 = vpop.permute.xlu0 %702  ;;  %v821_v28 = vpop.permute.xlu1 %820 }
  0xf7   : > { %v598_v21 = vadd.f32 %v597_v41, %v437_v15  ;;  %v731_v18 = vmax.f32 %v715_v33, 0.0  ;;  %v439_v56 = vmul.f32 %v1125_v24, %v1494_v43  ;;  %v841_v52 = vmul.f32 %v1510_v63, %v729_v44 }
  0xf8   : > { %v852_v50 = vadd.f32 %v851_v6, %v837_v16  ;;  %v838_v39 = vmul.f32 %v1488_v36, %v726_v22  ;;  %v840_v36 = vmul.f32 %v1498_v47, %v728_v37  ;;  %v603_v53 = vadd.f32 %v1524_v40, %v438_v46 }
  0xf9   : > { %v717_v42 = vadd.f32 %v688_v59, %v595_v61  ;;  %v732_v58 = vmax.f32 %v716_v49, 0.0  ;;  %v842_v12 = vmul.f32 %v1522_v38, %v730_v23  ;;  %v606_v60 = vadd.f32 %v1040_v13, %v439_v56 }
  0xfa   : > { %v853_v48 = vadd.f32 %v852_v50, %v838_v39  ;;  %v718_v0 = vadd.f32 %v693_v34, %v598_v21  ;;  %v843_v47 = vmul.f32 %v806_v5, %v731_v18  ;;  %v719_v1 = vadd.f32 %v698_v51, %v603_v53  ;;  %v826_v29 = vpop.permute.xlu0 %825  ;;  %v831_v9 = vpop.permute.xlu1 %830 }
  0xfb   : > { %v733_v2 = vmax.f32 %v717_v42, 0.0  ;;  %v844_v4 = vmul.f32 %v811_v17, %v732_v58  ;;  %v720_v43 = vadd.f32 %v703_v3, %v606_v60  ;;  %v871_v31 = vstv %s870_s22 }
  0xfc   : > { %v854_v25 = vadd.f32 %v853_v48, %v839_v45  ;;  %v734_v27 = vmax.f32 %v718_v0, 0.0  ;;  %v735_v40 = vmax.f32 %v719_v1, 0.0 }
  0xfd   : > { %v845_v59 = vmul.f32 %v816_v57, %v733_v2  ;;  %v736_v19 = vmax.f32 %v720_v43, 0.0 }
  0xfe   : > { %v855_v54 = vadd.f32 %v854_v25, %v840_v36  ;;  %v846_v8 = vmul.f32 %v821_v28, %v734_v27  ;;  %v847_v55 = vmul.f32 %v826_v29, %v735_v40 }
  0xff   : > { %v848_v10 = vmul.f32 %v831_v9, %v736_v19 }
 0x100   : > { %v856_v62 = vadd.f32 %v855_v54, %v841_v52 }
 0x102   : > { %v857_v26 = vadd.f32 %v856_v62, %v842_v12 }
 0x104   : > { %v858_v63 = vadd.f32 %v857_v26, %v843_v47 }
 0x106   : > { %v859_v7 = vadd.f32 %v858_v63, %v844_v4 }
 0x108   : > { %v860_v38 = vadd.f32 %v859_v7, %v845_v59 }
 0x10a   : > { %v861_v5 = vadd.f32 %v860_v38, %v846_v8 }
 0x10c   : > { %v862_v32 = vadd.f32 %v861_v5, %v847_v55 }
 0x10e   : > { %v863_v11 = vadd.f32 %v862_v32, %v848_v10 }
 0x110   : > { %v864_v13 = vrot.slane %v863_v11, 4 }
 0x112   : > { %v865_v14 = vadd.f32 %v864_v13, %v863_v11 }
 0x114   : > { %v866_v16 = vrot.slane %v865_v14, 2 }
 0x116   : > { %v867_v6 = vadd.f32 %v866_v16, %v865_v14 }
 0x118   : > { %v868_v22 = vrot.slane %v867_v6, 1 }
 0x11a   : > { %v869_v34 = vadd.f32 %v868_v22, %v867_v6 }
 0x11c   : > { %v872_v35 = vadd.f32 %v871_v31, %v869_v34 }
 0x11e   : > { %873 = vst [vmem:[%s280_s21] sm:$0x1] %v872_v35 }
 0x11f   : > { %1147 = shalt.err (!%p1144_p3)
}
 0x120   : > { %s1148_s16 = scalar_lea.hbm %s885_s30, 16  ;;  %s1152_s22 = scalar_lea.hbm %s1604_s7, 48 }
 0x121   : > { %p1149_p4 = scmp.ne.s32.totalorder %s885_s30, %s1148_s16  ;;  %p1153_p9 = scmp.lt.s32.totalorder %s885_s30, %s1604_s7 }
 0x122   : > { %p1154_p10 = scmp.lt.s32.totalorder %s1152_s22, %s1148_s16 }
 0x123   : > { %p1150_p7 = pnand %p1149_p4, %p1280_p5 }
 0x124   : > { %p1155_p11 = por %p1154_p10, %p1153_p9 }
 0x125   : > { %p1151_p8 = pneg %p1150_p7 }
 0x127   : > { %p1156_p12 = pnand %p1155_p11, %p1151_p8 }
 0x129   : > { %1159 = shalt.err (!%p1156_p12)
}
 0x12a   : > { %1043 = dma.vmem_to_hbm [thread:$0]  (%p1280_p5), %s888_s23, 16, %s885_s30, %s875_s9  }
 0x12b PF: > { %p1049_p13 = scmp.ge.s32.totalorder %s1194_s29, 2  ;;  %s899_s21 = sand.u32 1, %s1182_s26  }
 0x12c   : > { %s900_s24 = scalar_lea.sflag [#allocation4], %s899_s21 }
 0x12d   : > { %p1046_p0 = pnand %p1049_p13, %p1284_p6 }
 0x12f   : > { %p1047_p1 = pneg %p1046_p0 }
 0x131   : > { %1177 = dma.done.wait (%p1047_p1), %s900_s24, 16  }
 0x132   : > { %1179 = vsyncadd (%p1047_p1), %s900_s24, 4294967280  ;;  %p18_p2 = scmp.ge.s32.totalorder %s1267_s8, 5   ;;  %s1607_s26 = smov %s1186_s27 }
 0x133   : > { %s1608_s27 = smov %s1190_s28  ;;  %s1609_s28 = smov %s1278_s11 }
 0x134   : > { %s1610_s29 = smov %s1267_s8  ;;  %20 = sbr.rel (!%p18_p2) target bundleno = 5 (0x5), region = 86 }
 0x139   :  { %904 = vsyncpa [#allocation4], 1 }
 0x13a   :  { %906 = vsyncpa [#allocation4 + $0x1], 1 }

</bundles_post_ra>
